<compile_context>
chip_gen: v7x
topology: tpu7x:2x2x1
jax: 0.10.0
libtpu: 0.0.40
codegen_flags: <defaults>
</compile_context>

<pallas_src>
import functools

import jax
import jax.numpy as jnp
from jax.experimental import pallas as pl
from jax.experimental.pallas import tpu as pltpu


def _round_up(x, m):
    return ((x + m - 1) // m) * m


def _largest_aligned_divisor(full, align, cap):
    """Largest multiple of `align` <= cap that divides round_up(full, align).

    Returns (tile, padded_full).  `align` itself always divides the padded
    extent, so padding never exceeds align-1 elements.
    """
    padded = _round_up(full, align)
    best = align
    for cand in range(align, min(cap, padded) + 1, align):
        if padded % cand == 0:
            best = cand
    return best, padded


def _vmem_bytes(tm, kk, tn, x_isz, w_isz, o_isz, with_acc):
    """Estimated VMEM for double-buffered in/out tiles (+ optional f32 acc)."""
    b = 2 * (tm * kk * x_isz + kk * tn * w_isz + tn * 4) + 2 * tm * tn * o_isz
    if with_acc:
        b += tm * tn * 4
    return b


# ---------------------------------------------------------------------------
# Kernels
# ---------------------------------------------------------------------------
def _kernel_kwhole(x_ref, w_ref, b_ref, o_ref, *, compute_dtype):
    # x_ref: (tm, K), w_ref: (K, tn) [VMEM-resident across the inner M sweep],
    # b_ref: (1, tn), o_ref: (tm, tn)
    x = x_ref[...].astype(compute_dtype)
    w = w_ref[...].astype(compute_dtype)
    acc = jnp.dot(x, w, preferred_element_type=jnp.float32)
    acc = acc + b_ref[...].astype(jnp.float32)          # broadcast over rows
    o_ref[...] = acc.astype(o_ref.dtype)


def _kernel_ktiled(x_ref, w_ref, b_ref, o_ref, acc_ref, *, compute_dtype):
    # Fallback for huge d_model: K grid axis (innermost, "arbitrary") with an
    # f32 accumulator scratch.
    k = pl.program_id(2)

    @pl.when(k == 0)
    def _():
        acc_ref[...] = jnp.zeros_like(acc_ref)

    x = x_ref[...].astype(compute_dtype)
    w = w_ref[...].astype(compute_dtype)
    acc_ref[...] += jnp.dot(x, w, preferred_element_type=jnp.float32)

    @pl.when(k == pl.num_programs(2) - 1)
    def _():
        out = acc_ref[...] + b_ref[...].astype(jnp.float32)
        o_ref[...] = out.astype(o_ref.dtype)


# ---------------------------------------------------------------------------
# Wrapper
# ---------------------------------------------------------------------------
@functools.partial(jax.jit, static_argnames=("tm", "tn", "tk", "max_vmem_bytes"))
def generator_forward(x, weight_t, bias, *, tm=512, tn=1024, tk=1024,
                      max_vmem_bytes=48 * 1024 * 1024):
    """x: (B, S, d_model); weight_t: (d_model, n_vocab); bias: (n_vocab,).

    weight_t is the transpose of PyTorch's nn.Linear weight (n_vocab, d_model).
    Returns (B, S, n_vocab) = x @ weight_t + bias (dtype of x).
    """
    B, S, K = x.shape
    N = weight_t.shape[1]
    M = B * S

    out_dtype = x.dtype
    # bf16 operands feed the MXU at full rate; accumulation stays f32.
    compute_dtype = jnp.bfloat16 if x.dtype == jnp.float32 else x.dtype

    x2d = x.reshape(M, K)
    w = weight_t
    b2d = bias.reshape(1, N)

    x_isz = jnp.dtype(x.dtype).itemsize
    w_isz = jnp.dtype(w.dtype).itemsize
    o_isz = jnp.dtype(out_dtype).itemsize

    # --- tile selection: tiles divide the minimally padded extents -----------
    tm_eff, M_pad = _largest_aligned_divisor(M, 8, tm)      # pad M by <= 7 rows
    tn_eff, N_pad = _largest_aligned_divisor(N, 128, tn)    # pad N by <= 127 cols

    k_whole = _vmem_bytes(tm_eff, K, tn_eff, x_isz, w_isz, o_isz, False) \
        <= max_vmem_bytes

    if k_whole:
        K_pad, tk_eff = K, K
        need = _vmem_bytes(tm_eff, K, tn_eff, x_isz, w_isz, o_isz, False)
    else:
        # K-tiled fallback (e.g. very large d_model vs. v7x's 64 MiB VMEM/TC).
        tk_eff, K_pad = _largest_aligned_divisor(K, 128, tk)
        while tk_eff > 128 and _vmem_bytes(tm_eff, tk_eff, tn_eff, x_isz, w_isz,
                                           o_isz, True) > max_vmem_bytes:
            cand = tk_eff - 128
            while cand > 128 and K_pad % cand != 0:
                cand -= 128
            tk_eff = cand
        need = _vmem_bytes(tm_eff, tk_eff, tn_eff, x_isz, w_isz, o_isz, True)

    # --- pad only what is actually misaligned (K is zero-padded => exact) ----
    if M_pad != M:
        x2d = jnp.pad(x2d, ((0, M_pad - M), (0, 0)))
    if K_pad != K:
        x2d = jnp.pad(x2d, ((0, 0), (0, K_pad - K)))
        w = jnp.pad(w, ((0, K_pad - K), (0, 0)))
    if N_pad != N:
        w = jnp.pad(w, ((0, 0), (0, N_pad - N)))
        b2d = jnp.pad(b2d, ((0, 0), (0, N_pad - N)))

    nj = N_pad // tn_eff
    ni = M_pad // tm_eff

    # Right-sized scoped-VMEM request: actual buffers + ~20% margin.
    vmem_limit = max(int(need * 1.2), 32 * 1024 * 1024)

    cost = pl.CostEstimate(
        flops=2 * M_pad * K_pad * N_pad,
        transcendentals=0,
        bytes_accessed=(nj * M_pad * K_pad * x_isz   # x streamed once per N block
                        + K_pad * N_pad * w_isz      # weight read once (resident)
                        + N_pad * 4
                        + M_pad * N_pad * o_isz),
    )

    if k_whole:
        kernel = functools.partial(_kernel_kwhole, compute_dtype=compute_dtype)
        grid_spec = pltpu.PrefetchScalarGridSpec(
            num_scalar_prefetch=0,
            grid=(nj, ni),                 # N outer -> weight block VMEM-resident
            in_specs=[
                pl.BlockSpec((tm_eff, K_pad), lambda j, i: (i, 0)),   # x rows
                pl.BlockSpec((K_pad, tn_eff), lambda j, i: (0, j)),   # weight cols
                pl.BlockSpec((1, tn_eff), lambda j, i: (0, j)),       # bias cols
            ],
            out_specs=pl.BlockSpec((tm_eff, tn_eff), lambda j, i: (i, j)),
        )
        dims = ("parallel", "parallel")
    else:
        nk = K_pad // tk_eff
        kernel = functools.partial(_kernel_ktiled, compute_dtype=compute_dtype)
        grid_spec = pltpu.PrefetchScalarGridSpec(
            num_scalar_prefetch=0,
            grid=(nj, ni, nk),             # reduction axis last
            in_specs=[
                pl.BlockSpec((tm_eff, tk_eff), lambda j, i, k: (i, k)),
                pl.BlockSpec((tk_eff, tn_eff), lambda j, i, k: (k, j)),
                pl.BlockSpec((1, tn_eff), lambda j, i, k: (0, j)),
            ],
            out_specs=pl.BlockSpec((tm_eff, tn_eff), lambda j, i, k: (i, j)),
            scratch_shapes=[pltpu.VMEM((tm_eff, tn_eff), jnp.float32)],
        )
        dims = ("parallel", "parallel", "arbitrary")

    out2d = pl.pallas_call(
        kernel,
        out_shape=jax.ShapeDtypeStruct((M_pad, N_pad), out_dtype),
        grid_spec=grid_spec,
        compiler_params=pltpu.CompilerParams(
            dimension_semantics=dims,
            vmem_limit_bytes=vmem_limit,
        ),
        cost_estimate=cost,
    )(x2d, w, b2d)

    if M_pad != M or N_pad != N:
        out2d = out2d[:M, :N]
    return out2d.reshape(B, S, N)


def init_generator_params(key, d_model, n_vocab, dtype=jnp.float32):
    """Deterministic init matching nn.Linear defaults: U(-1/sqrt(fan_in), ...)."""
    kw, kb = jax.random.split(key)
    bound = 1.0 / (d_model ** 0.5)
    # PyTorch stores weight as (n_vocab, d_model); we keep the transpose.
    weight_t = jax.random.uniform(kw, (d_model, n_vocab), dtype, -bound, bound)
    bias = jax.random.uniform(kb, (n_vocab,), dtype, -bound, bound)
    return weight_t, bias


def _reference_bf16(x, weight_t, bias):
    """Same math as the kernel (bf16 operands, f32 accumulate, f32 bias add)."""
    B, S, K = x.shape
    xb = x.reshape(B * S, K).astype(jnp.bfloat16)
    wb = weight_t.astype(jnp.bfloat16)
    out = jnp.dot(xb, wb, preferred_element_type=jnp.float32)
    out = out + bias.astype(jnp.float32)
    return out.reshape(B, S, -1).astype(x.dtype)


if __name__ == "__main__":
    key = jax.random.PRNGKey(0)
    k_x, k_p, k_x2, k_p2, k_x3, k_p3 = jax.random.split(key, 6)

    # --- small shapes consistent with the module (single-tile, padded vocab) ---
    batch, seq, d_model, n_vocab = 2, 8, 32, 64
    x = jax.random.normal(k_x, (batch, seq, d_model), dtype=jnp.float32)
    weight_t, bias = init_generator_params(k_p, d_model, n_vocab)

    out = jax.block_until_ready(generator_forward(x, weight_t, bias))
    assert out.shape == (batch, seq, n_vocab)
    assert out.dtype == x.dtype
    ref = _reference_bf16(x, weight_t, bias)
    assert jnp.allclose(out, ref, atol=2e-3, rtol=1e-2)
    # sanity vs. full-f32 math (bf16 MXU operands => looser tolerance)
    ref_f32 = x @ weight_t + bias
    assert jnp.allclose(out, ref_f32, atol=5e-2, rtol=5e-2)

    # --- larger shapes exercising the multi-tile (N-outer / M-inner) grid -----
    b2, s2, d2, v2 = 4, 128, 128, 2048     # grid = (2, 1) with tm=512, tn=1024
    x2 = jax.random.normal(k_x2, (b2, s2, d2), dtype=jnp.float32)
    w2, bias2 = init_generator_params(k_p2, d2, v2)
    out2 = jax.block_until_ready(generator_forward(x2, w2, bias2))
    assert out2.shape == (b2, s2, v2)
    assert jnp.allclose(out2, _reference_bf16(x2, w2, bias2), atol=2e-3, rtol=1e-2)

    # --- force the K-tiled accumulator path (VMEM guard used on v7x) ----------
    b3, s3, d3, v3 = 2, 64, 256, 512
    x3 = jax.random.normal(k_x3, (b3, s3, d3), dtype=jnp.float32)
    w3, bias3 = init_generator_params(k_p3, d3, v3)
    out3 = jax.block_until_ready(
        generator_forward(x3, w3, bias3, max_vmem_bytes=1))   # tiny budget -> K tiling
    assert out3.shape == (b3, s3, v3)
    assert jnp.allclose(out3, _reference_bf16(x3, w3, bias3), atol=2e-3, rtol=1e-2)

    print("KERNEL_OK")
</pallas_src>

<mosaic_0001>
module attributes {stable_mosaic.version = 11 : i64} {
  func.func @_kernel_kwhole(%arg0: i32, %arg1: i32, %arg2: memref<16x32xf32, #tpu.memory_space<vmem>>, %arg3: memref<32x128xf32, #tpu.memory_space<vmem>>, %arg4: memref<1x128xf32, #tpu.memory_space<vmem>>, %arg5: memref<16x128xf32, #tpu.memory_space<vmem>>) attributes {dimension_semantics = [#tpu.dimension_semantics<parallel>, #tpu.dimension_semantics<parallel>], iteration_bounds = array<i64: 1, 1>, scalar_prefetch = 0 : i64, scratch_operands = 0 : i64, tpu.core_type = #tpu.core_type<tc>, window_params = [{transform_indices = @transform_0, window_bounds = array<i64: 16, 32>}, {transform_indices = @transform_1, window_bounds = array<i64: 32, 128>}, {transform_indices = @transform_2, window_bounds = array<i64: 1, 128>}, {transform_indices = @transform_3, window_bounds = array<i64: 16, 128>}]} {
    %c0 = arith.constant 0 : index
    %c0_0 = arith.constant 0 : index
    %0 = vector.load %arg2[%c0, %c0_0] : memref<16x32xf32, #tpu.memory_space<vmem>>, vector<16x32xf32>
    %1 = arith.truncf %0 : vector<16x32xf32> to vector<16x32xbf16>
    %c0_1 = arith.constant 0 : index
    %c0_2 = arith.constant 0 : index
    %2 = vector.load %arg3[%c0_1, %c0_2] : memref<32x128xf32, #tpu.memory_space<vmem>>, vector<32x128xf32>
    %3 = arith.truncf %2 : vector<32x128xf32> to vector<32x128xbf16>
    %cst = arith.constant dense<0.000000e+00> : vector<16x128xf32>
    %4 = tpu.matmul %1, %3, %cst {dimension_numbers = #tpu.dot_dimension_numbers<[1], [0], [0], [1], [0, 0, 1, 1], [], []>} : vector<16x32xbf16>, vector<32x128xbf16>, vector<16x128xf32> -> vector<16x128xf32>
    %c0_3 = arith.constant 0 : index
    %c0_4 = arith.constant 0 : index
    %5 = vector.load %arg4[%c0_3, %c0_4] : memref<1x128xf32, #tpu.memory_space<vmem>>, vector<1x128xf32>
    %6 = vector.broadcast %5 : vector<1x128xf32> to vector<16x128xf32>
    %7 = arith.addf %4, %6 : vector<16x128xf32>
    %c0_5 = arith.constant 0 : index
    %c0_6 = arith.constant 0 : index
    %8 = vector.load %arg5[%c0_5, %c0_6] : memref<16x128xf32, #tpu.memory_space<vmem>>, vector<16x128xf32>
    tpu.vector_store %arg5[%c0_5, %c0_6], %7 {strides = array<i32>} : memref<16x128xf32, #tpu.memory_space<vmem>>, vector<16x128xf32>,
    return
  }
  func.func @transform_0(%arg0: i32, %arg1: i32) -> (i32, i32) {
    %c0_i32 = arith.constant 0 : i32
    %c0_i32_0 = arith.constant 0 : i32
    return %arg1, %c0_i32 : i32, i32
  }
  func.func @transform_1(%arg0: i32, %arg1: i32) -> (i32, i32) {
    %c0_i32 = arith.constant 0 : i32
    %c0_i32_0 = arith.constant 0 : i32
    return %c0_i32, %arg0 : i32, i32
  }
  func.func @transform_2(%arg0: i32, %arg1: i32) -> (i32, i32) {
    %c0_i32 = arith.constant 0 : i32
    %c0_i32_0 = arith.constant 0 : i32
    return %c0_i32, %arg0 : i32, i32
  }
  func.func @transform_3(%arg0: i32, %arg1: i32) -> (i32, i32) {
    %c0_i32 = arith.constant 0 : i32
    return %arg1, %arg0 : i32, i32
  }
}

</mosaic_0001>

<bundles_post_ra>
// kernel: generator_forward.1
= control target key start
LH: loop header
LB: loop body
LE: loop exit
PB: predicated region body
PF: predicated region fallthrough
CT: control target
= control target key end

     0   :  { %v97_v0 = vmov 0.0   ;;  %vm98_vm0 = vmmov 0   ;;  %vm31_vm1 = vcmask 261120   ;;  %s146_s1 = inlined_call_operand.vmem [shape: f32[32,128], index: 1, kind: input, shape index: {}]   ;;  %s147_s0 = inlined_call_operand.vmem [shape: f32[16,32], index: 0, kind: input, shape index: {}]   ;;  %s148_s2 = inlined_call_operand.vmem [shape: f32[1,128], index: 2, kind: input, shape index: {}]   ;;  %s149_s3 = inlined_call_operand.vmem [shape: f32[16,128], index: 3, kind: output, shape index: {}]  }
   0x1   :  { %87 = vmatprep.subr.bf16.mxu0 %v97_v0  ;;  %v18_v1 = vld [vmem:[%s146_s1] sm:$0xff]  ;;  %v19_v2 = vld [vmem:[%s146_s1 + $0x8] sm:$0xff]  ;;  %v20_v3 = vld [vmem:[%s146_s1 + $0x10] sm:$0xff]  ;;  %91 = vmatprep.mubr.msk.bf16.mxu0 %vm98_vm0, %v97_v0 }
   0x2   :  { %v22_v4 = vpack.c.bf16 %v19_v2, %v18_v1  ;;  %v21_v5 = vld [vmem:[%s146_s1 + $0x18] sm:$0xff]  ;;  %v15_v7 = vld [vmem:[%s147_s0] sm:$0xff]  ;;  %v16_v8 = vld [vmem:[%s147_s0 + $0x8] sm:$0xff] }
   0x3   :  { %v23_v6 = vpack.c.bf16 %v21_v5, %v20_v3  ;;  %v17_v9 = vpack.c.bf16 %v16_v8, %v15_v7  ;;  %v82_v10 = vld [vmem:[%s148_s2] ss:$0 sm:$0xff] }
   0x4   :  { %88 = vmatpush3.bf16.msra.mxu0 %v22_v4 }
   0x5   :  { %89 = vmatprep.subr.bf16.mxu0 %v97_v0 }
   0x8   :  { %90 = vmatpush3.bf16.msra.mxu0 %v23_v6 }
   0xb   :  { %92 = vmatmul.mubr.msk.bf16.vlgmr.msra.gmra.mrb[0].mxu0 %vm31_vm1, %v17_v9 }
  0xde   :  { %v69_v11 = vpop.f32.mrb[0].mxu0 }
  0xdf   :  { %v70_v12 = vadd.f32 %v82_v10, %v69_v11  ;;  %v93_v13 = vpop.f32.mrb[1].mxu0 }
  0xe0   :  { %v72_v14 = vpop.f32.mrb[2].mxu0 }
  0xe1   :  { %76 = vst [vmem:[%s149_s3] sm:$0xff] %v70_v12  ;;  %v73_v15 = vadd.f32 %v82_v10, %v72_v14  ;;  %v94_v16 = vpop.f32.mrb[3].mxu0 }
  0xe3   :  { %77 = vst [vmem:[%s149_s3 + $0x8] sm:$0xff] %v73_v15 }

</bundles_post_ra>
